<compile_context>
chip_gen: v6e
topology: v6e:2x2x1
jax: 0.10.0
libtpu: 0.0.40
codegen_flags: <defaults>
</compile_context>

<pallas_src>
import functools

import jax
import jax.numpy as jnp
from jax.experimental import pallas as pl
from jax.experimental.pallas import tpu as pltpu

IN_CH = 3
OUT_CH = 12
KSIZE = 4


def _conv_relu_kernel(x_ref, w_ref, b_ref, o_ref, *, K, rows):
    # x_ref: (rows, W*Cin)      w_ref: (K, W*Cin, Wo*Cout)
    # b_ref: (1, Wo*Cout)       o_ref: (rows, Wo*Cout)   with rows = Nb * H
    acc = jnp.broadcast_to(b_ref[...].astype(jnp.float32), o_ref.shape)
    x = x_ref[...]                                        # loaded once per step
    for kh in range(K):                                   # K lane-dense MXU matmuls
        p = jnp.dot(x, w_ref[kh], preferred_element_type=jnp.float32)
        if kh:
            # p[r] <- p_orig[r + kh]  (sublane rotate on the XLU; rows where the
            # rotate wraps across images are garbage and sliced in the wrapper)
            p = pltpu.roll(p, shift=rows - kh, axis=0)
        acc = acc + p
    o_ref[...] = jnp.maximum(acc, 0.0).astype(o_ref.dtype)


def _build_banded_weight(w_oikk, W):
    """W_band[kh, w*Cin+ci, wo*Cout+co] = w[co, ci, kh, w-wo], zero if w-wo outside [0, K)."""
    Cout, Cin, K, _ = w_oikk.shape
    Wo = W - K + 1
    w_kkio = jnp.transpose(w_oikk, (2, 3, 1, 0))          # (K, K, Cin, Cout)
    w_pos = jnp.arange(W)[:, None]                        # (W, 1)
    wo = jnp.arange(Wo)[None, :]                          # (1, Wo)
    kw = w_pos - wo                                       # (W, Wo)
    valid = (kw >= 0) & (kw < K)
    band = w_kkio[:, jnp.clip(kw, 0, K - 1), :, :]        # (K, W, Wo, Cin, Cout)
    band = band * valid[None, :, :, None, None].astype(w_kkio.dtype)
    band = jnp.transpose(band, (0, 1, 3, 2, 4))           # (K, W, Cin, Wo, Cout)
    return band.reshape(K, W * Cin, Wo * Cout)


def _pick_batch_block(N, H):
    """Fixed, small batch block: multiple of 8, <= 64, dividing N.

    Aims for >= 8 grid steps (pipelining + both v7x TensorCores busy) while
    keeping double-buffered blocks at a few MiB (safe under v5e's 16 MiB
    scoped-VMEM default and v7x's 64 MiB physical VMEM).
    """
    if N <= 8:
        return N                                          # tiny batch: one step
    cap = max(8, min(64, N // 8))
    cap -= cap % 8
    for nb in range(cap, 7, -8):                          # multiple-of-8 divisor
        if N % nb == 0:
            return nb
    for nb in range(min(cap, N), 0, -1):                  # odd/prime batch fallback
        if N % nb == 0 and (nb * H) % 8 == 0:
            return nb
    return N


def patch_cnn_forward(x_nchw, w_oikk, bias, *, batch_block=None):
    """x_nchw: (N, Cin, H, W) f32; w_oikk: (Cout, Cin, K, K); bias: (Cout,). Returns NCHW."""
    N, Cin, H, W = x_nchw.shape
    Cout, _, K, _ = w_oikk.shape
    Ho, Wo = H - K + 1, W - K + 1
    WC, WoCo = W * Cin, Wo * Cout

    Nb = batch_block if batch_block is not None else _pick_batch_block(N, H)
    assert N % Nb == 0
    rows = Nb * H

    # Wrapper-side layout plumbing (contiguous XLA transpose, then free reshape).
    x_rows = jnp.transpose(x_nchw, (0, 2, 3, 1)).reshape(N * H, WC)   # (N*H, W*Cin)
    w_band = _build_banded_weight(w_oikk, W)                          # (K, W*Cin, Wo*Cout)
    b_tiled = jnp.tile(bias, (Wo,)).reshape(1, WoCo)                  # bias in output layout

    kernel = functools.partial(_conv_relu_kernel, K=K, rows=rows)

    out_rows = pl.pallas_call(
        kernel,
        out_shape=jax.ShapeDtypeStruct((N * H, WoCo), jnp.float32),
        grid_spec=pltpu.PrefetchScalarGridSpec(
            num_scalar_prefetch=0,
            grid=(N // Nb,),
            in_specs=[
                pl.BlockSpec((rows, WC), lambda i: (i, 0)),
                pl.BlockSpec((K, WC, WoCo), lambda i: (0, 0, 0)),
                pl.BlockSpec((1, WoCo), lambda i: (0, 0)),
            ],
            out_specs=pl.BlockSpec((rows, WoCo), lambda i: (i, 0)),
        ),
        compiler_params=pltpu.CompilerParams(
            dimension_semantics=("parallel",),
            # Explicit headroom; blocks are ~1-2 MiB double-buffered, well under
            # every generation's scoped/physical VMEM.
            vmem_limit_bytes=32 * 1024 * 1024,
        ),
    )(x_rows, w_band, b_tiled)

    # Drop the K-1 garbage rows per image, back to PyTorch NCHW convention.
    out = out_rows.reshape(N, H, Wo, Cout)[:, :Ho]
    return jnp.transpose(out, (0, 3, 1, 2))


if __name__ == "__main__":
    key = jax.random.PRNGKey(0)
    kx, kw, kb = jax.random.split(key, 3)

    # Small deterministic example consistent with the module defaults.
    N, H, W = 2, 16, 16
    x = jax.random.normal(kx, (N, IN_CH, H, W), dtype=jnp.float32)

    # Deterministic parameter init (shapes match nn.Conv2d(3, 12, 4)).
    fan_in = IN_CH * KSIZE * KSIZE
    bound = 1.0 / (fan_in ** 0.5)
    w = jax.random.uniform(kw, (OUT_CH, IN_CH, KSIZE, KSIZE),
                           minval=-bound, maxval=bound, dtype=jnp.float32)
    b = jax.random.uniform(kb, (OUT_CH,),
                           minval=-bound, maxval=bound, dtype=jnp.float32)

    fwd = jax.jit(patch_cnn_forward)
    out = jax.block_until_ready(fwd(x, w, b))

    # Cross-check against XLA's native conv + relu.
    ref = jax.lax.conv_general_dilated(
        x, w, window_strides=(1, 1), padding="VALID",
        dimension_numbers=("NCHW", "OIHW", "NCHW"))
    ref = jnp.maximum(ref + b.reshape(1, OUT_CH, 1, 1), 0.0)
    assert out.shape == (N, OUT_CH, H - KSIZE + 1, W - KSIZE + 1)
    assert jnp.allclose(out, ref, atol=1e-4, rtol=1e-4)

    print("KERNEL_OK")
</pallas_src>

<mosaic_0001>
module attributes {stable_mosaic.version = 11 : i64} {
  func.func @_conv_relu_kernel(%arg0: i32, %arg1: memref<32x48xf32, #tpu.memory_space<vmem>>, %arg2: memref<4x48x156xf32, #tpu.memory_space<vmem>>, %arg3: memref<1x156xf32, #tpu.memory_space<vmem>>, %arg4: memref<32x156xf32, #tpu.memory_space<vmem>>) attributes {dimension_semantics = [#tpu.dimension_semantics<parallel>], iteration_bounds = array<i64: 1>, scalar_prefetch = 0 : i64, scratch_operands = 0 : i64, tpu.core_type = #tpu.core_type<tc>, window_params = [{transform_indices = @transform_0, window_bounds = array<i64: 32, 48>}, {pipeline_mode = #tpu.pipeline_mode<synchronous>, transform_indices = @transform_1, window_bounds = array<i64: 4, 48, 156>}, {pipeline_mode = #tpu.pipeline_mode<synchronous>, transform_indices = @transform_2, window_bounds = array<i64: 1, 156>}, {transform_indices = @transform_3, window_bounds = array<i64: 32, 156>}]} {
    %c0 = arith.constant 0 : index
    %c0_0 = arith.constant 0 : index
    %0 = vector.load %arg3[%c0, %c0_0] : memref<1x156xf32, #tpu.memory_space<vmem>>, vector<1x156xf32>
    %1 = vector.shape_cast %0 : vector<1x156xf32> to vector<1x156xf32>
    %2 = vector.broadcast %1 : vector<1x156xf32> to vector<32x156xf32>
    %c0_1 = arith.constant 0 : index
    %c0_2 = arith.constant 0 : index
    %3 = vector.load %arg1[%c0_1, %c0_2] : memref<32x48xf32, #tpu.memory_space<vmem>>, vector<32x48xf32>
    %c0_3 = arith.constant 0 : index
    %c0_4 = arith.constant 0 : index
    %c0_5 = arith.constant 0 : index
    %4 = vector.load %arg2[%c0_3, %c0_4, %c0_5] : memref<4x48x156xf32, #tpu.memory_space<vmem>>, vector<1x48x156xf32>
    %5 = vector.shape_cast %4 : vector<1x48x156xf32> to vector<48x156xf32>
    %cst = arith.constant dense<0.000000e+00> : vector<32x156xf32>
    %6 = tpu.matmul %3, %5, %cst {dimension_numbers = #tpu.dot_dimension_numbers<[1], [0], [0], [1], [0, 0, 1, 1], [], []>} : vector<32x48xf32>, vector<48x156xf32>, vector<32x156xf32> -> vector<32x156xf32>
    %7 = arith.addf %2, %6 : vector<32x156xf32>
    %c1 = arith.constant 1 : index
    %c0_6 = arith.constant 0 : index
    %c0_7 = arith.constant 0 : index
    %8 = vector.load %arg2[%c1, %c0_6, %c0_7] : memref<4x48x156xf32, #tpu.memory_space<vmem>>, vector<1x48x156xf32>
    %9 = vector.shape_cast %8 : vector<1x48x156xf32> to vector<48x156xf32>
    %cst_8 = arith.constant dense<0.000000e+00> : vector<32x156xf32>
    %10 = tpu.matmul %3, %9, %cst_8 {dimension_numbers = #tpu.dot_dimension_numbers<[1], [0], [0], [1], [0, 0, 1, 1], [], []>} : vector<32x48xf32>, vector<48x156xf32>, vector<32x156xf32> -> vector<32x156xf32>
    %c31_i32 = arith.constant 31 : i32
    %11 = tpu.dynamic_rotate %10 by %c31_i32 dim 0 : vector<32x156xf32>, i32 -> vector<32x156xf32>
    %12 = arith.addf %7, %11 : vector<32x156xf32>
    %c2 = arith.constant 2 : index
    %c0_9 = arith.constant 0 : index
    %c0_10 = arith.constant 0 : index
    %13 = vector.load %arg2[%c2, %c0_9, %c0_10] : memref<4x48x156xf32, #tpu.memory_space<vmem>>, vector<1x48x156xf32>
    %14 = vector.shape_cast %13 : vector<1x48x156xf32> to vector<48x156xf32>
    %cst_11 = arith.constant dense<0.000000e+00> : vector<32x156xf32>
    %15 = tpu.matmul %3, %14, %cst_11 {dimension_numbers = #tpu.dot_dimension_numbers<[1], [0], [0], [1], [0, 0, 1, 1], [], []>} : vector<32x48xf32>, vector<48x156xf32>, vector<32x156xf32> -> vector<32x156xf32>
    %c30_i32 = arith.constant 30 : i32
    %16 = tpu.dynamic_rotate %15 by %c30_i32 dim 0 : vector<32x156xf32>, i32 -> vector<32x156xf32>
    %17 = arith.addf %12, %16 : vector<32x156xf32>
    %c3 = arith.constant 3 : index
    %c0_12 = arith.constant 0 : index
    %c0_13 = arith.constant 0 : index
    %18 = vector.load %arg2[%c3, %c0_12, %c0_13] : memref<4x48x156xf32, #tpu.memory_space<vmem>>, vector<1x48x156xf32>
    %19 = vector.shape_cast %18 : vector<1x48x156xf32> to vector<48x156xf32>
    %cst_14 = arith.constant dense<0.000000e+00> : vector<32x156xf32>
    %20 = tpu.matmul %3, %19, %cst_14 {dimension_numbers = #tpu.dot_dimension_numbers<[1], [0], [0], [1], [0, 0, 1, 1], [], []>} : vector<32x48xf32>, vector<48x156xf32>, vector<32x156xf32> -> vector<32x156xf32>
    %c29_i32 = arith.constant 29 : i32
    %21 = tpu.dynamic_rotate %20 by %c29_i32 dim 0 : vector<32x156xf32>, i32 -> vector<32x156xf32>
    %22 = arith.addf %17, %21 : vector<32x156xf32>
    %cst_15 = arith.constant 0.000000e+00 : f32
    %23 = vector.broadcast %cst_15 : f32 to vector<32x156xf32>
    %24 = arith.maximumf %22, %23 : vector<32x156xf32>
    %c0_16 = arith.constant 0 : index
    %c0_17 = arith.constant 0 : index
    %25 = vector.load %arg4[%c0_16, %c0_17] : memref<32x156xf32, #tpu.memory_space<vmem>>, vector<32x156xf32>
    tpu.vector_store %arg4[%c0_16, %c0_17], %24 {strides = array<i32>} : memref<32x156xf32, #tpu.memory_space<vmem>>, vector<32x156xf32>,
    return
  }
  func.func @transform_0(%arg0: i32) -> (i32, i32) {
    %c0_i32 = arith.constant 0 : i32
    %c0_i32_0 = arith.constant 0 : i32
    return %arg0, %c0_i32 : i32, i32
  }
  func.func @transform_1(%arg0: i32) -> (i32, i32, i32) {
    %c0_i32 = arith.constant 0 : i32
    %c0_i32_0 = arith.constant 0 : i32
    %c0_i32_1 = arith.constant 0 : i32
    %c0_i32_2 = arith.constant 0 : i32
    return %c0_i32, %c0_i32_0, %c0_i32_1 : i32, i32, i32
  }
  func.func @transform_2(%arg0: i32) -> (i32, i32) {
    %c0_i32 = arith.constant 0 : i32
    %c0_i32_0 = arith.constant 0 : i32
    %c0_i32_1 = arith.constant 0 : i32
    return %c0_i32, %c0_i32_0 : i32, i32
  }
  func.func @transform_3(%arg0: i32) -> (i32, i32) {
    %c0_i32 = arith.constant 0 : i32
    %c0_i32_0 = arith.constant 0 : i32
    return %arg0, %c0_i32 : i32, i32
  }
}

</mosaic_0001>

<bundles_post_ra>
// kernel: tile.8
= control target key start
LH: loop header
LB: loop body
LE: loop exit
PB: predicated region body
PF: predicated region fallthrough
CT: control target
= control target key end

     0   :  { %s28_s0 = inlined_call_operand.vmem [shape: f32[12], index: 0, kind: input, shape index: {}]   ;;  %s29_s1 = inlined_call_operand.vmem [shape: f32[13,12], index: 1, kind: output, shape index: {}]  }
   0x1   :  { %v4_v0 = vld [vmem:[%s28_s0] ss:$0 sm:$0xff] }
   0x2   :  { %5 = vst [vmem:[%s29_s1] sm:$0xff] %v4_v0  ;;  %8 = vst [vmem:[%s29_s1 + $0x8] sm:$0xff] %v4_v0 }

// kernel: tile.9
= control target key start
LH: loop header
LB: loop body
LE: loop exit
PB: predicated region body
PF: predicated region fallthrough
CT: control target
= control target key end

     0   :  { %vm9_vm0 = vcmask 64512   ;;  %s126_s10 = smov 96   ;;  %s127_s15 = smov 120   ;;  %vm3_vm1 = vcmask 97280   ;;  %vm13_vm2 = vcmask 31744   ;;  %vm16_vm3 = vcmask 1048512   ;;  %s196_s0 = inlined_call_operand.vmem [shape: f32[13,12], index: 0, kind: input, shape index: {}]   ;;  %s197_s1 = inlined_call_operand.vmem [shape: f32[1,156], index: 1, kind: output, shape index: {}]  }
   0x1   :  { %v103_v0 = vld [vmem:[%s196_s0 + $0x8] sm:$0x1]   ;;  %v100_v1 = vld [vmem:[%s196_s0 + $0xa] sm:$0x1]   ;;  %v104_v4 = vld [vmem:[%s196_s0 + $0x7] sm:$0x1]  }
   0x2   :  { %26 = vrot.lane.b32.xlu1 %v103_v0, %s126_s10  ;;  %v101_v2 = vld [vmem:[%s196_s0 + $0xa] sm:$0x1]   ;;  %v102_v5 = vld [vmem:[%s196_s0 + $0x9] sm:$0x1]   ;;  %s128_s18 = smov 84   ;;  %s129_s21 = smov 108  }
   0x3   :  { %v10_v3 = vsel %vm9_vm0, %v101_v2, %v100_v1  ;;  %v106_v6 = vld [vmem:[%s196_s0 + $0x5] sm:$0x1]   ;;  %v2_v7 = vld [vmem:[%s196_s0] sm:$0x1]   ;;  %v105_v8 = vld [vmem:[%s196_s0 + $0x6] sm:$0x1]  }
   0x4   :  { %11 = vrot.lane.b32.xlu0 %v10_v3, %s127_s15  ;;  %4 = vst.msk [vmem:[#allocation0] sm:$0x1] %vm3_vm1, %v2_v7   ;;  %s130_s26 = smov 60   ;;  %v108_v9 = vld [vmem:[%s196_s0 + $0x3] sm:$0x1]   ;;  %s131_s29 = smov 72  }
   0x5   :  { %v107_v10 = vld [vmem:[%s196_s0 + $0x4] sm:$0x1]   ;;  %s132_s3 = smov 36   ;;  %v110_v11 = vld [vmem:[%s196_s0 + $0xc] sm:$0x1]   ;;  %s133_s6 = smov 48  }
   0x6   :  { %32 = vrot.lane.b32.xlu1 %v104_v4, %s128_s18  ;;  %v109_v12 = vld [vmem:[%s196_s0 + $0x2] sm:$0x1]   ;;  %s134_s9 = smov 16   ;;  %v112_v13 = vld [vmem:[%s196_s0 + $0xb] sm:$0x1]   ;;  %s135_s12 = smov 24  }
   0x7   :  { %v111_v14 = vld [vmem:[%s196_s0 + $0x1] sm:$0x1]   ;;  %s136_s0 = smov 4   ;;  %s137_s15 = smov 12   ;;  %vm22_vm4 = vcmask 982880   ;;  %vm28_vm5 = vcmask 884480  }
   0x8   :  { %20 = vrot.lane.b32.xlu0 %v102_v5, %s129_s21  ;;  %vm34_vm6 = vcmask 786080   ;;  %vm40_vm7 = vcmask 687680   ;;  %vm46_vm8 = vcmask 589280   ;;  %vm52_vm9 = vcmask 490880  }
   0x9   :  { %vm58_vm10 = vcmask 392480   ;;  %vm70_vm11 = vcmask 228480   ;;  %vm64_vm12 = vcmask 294080   ;;  %vm83_vm13 = vcmask 130080  }
   0xa   :  { %44 = vrot.lane.b32.xlu1 %v106_v6, %s130_s26  ;;  %vm77_vm14 = vcmask 195680  }
   0xc   :  { %38 = vrot.lane.b32.xlu0 %v105_v8, %s131_s29 }
   0xe   :  { %56 = vrot.lane.b32.xlu1 %v108_v9, %s132_s3 }
  0x10   :  { %50 = vrot.lane.b32.xlu0 %v107_v10, %s133_s6 }
  0x12   :  { %68 = vrot.lane.b32.xlu1 %v110_v11, %s134_s9 }
  0x14   :  { %62 = vrot.lane.b32.xlu0 %v109_v12, %s135_s12 }
  0x16   :  { %81 = vrot.lane.b32.xlu1 %v112_v13, %s136_s0 }
  0x18   :  { %75 = vrot.lane.b32.xlu0 %v111_v14, %s137_s15 }
  0x74   :  { %v27_v15 = vpop.permute.xlu1 %26  }
  0x76   :  { %v12_v16 = vpop.permute.xlu0 %11  }
  0x77   :  { %15 = vst.msk [vmem:[#allocation0 + $0x8] sm:$0x1] %vm13_vm2, %v12_v16  }
  0x78   :  { %17 = vst.msk [vmem:[#allocation0] sm:$0x1] %vm16_vm3, %v12_v16   ;;  %v33_v17 = vpop.permute.xlu1 %32  }
  0x7a   :  { %v21_v18 = vpop.permute.xlu0 %20  }
  0x7b   :  { %23 = vst.msk [vmem:[#allocation0] sm:$0x1] %vm22_vm4, %v21_v18  }
  0x7c   :  { %29 = vst.msk [vmem:[#allocation0] sm:$0x1] %vm28_vm5, %v27_v15   ;;  %v45_v19 = vpop.permute.xlu1 %44  }
  0x7d   :  { %35 = vst.msk [vmem:[#allocation0] sm:$0x1] %vm34_vm6, %v33_v17  }
  0x7e   :  { %v39_v20 = vpop.permute.xlu0 %38  }
  0x7f   :  { %41 = vst.msk [vmem:[#allocation0] sm:$0x1] %vm40_vm7, %v39_v20  }
  0x80   :  { %47 = vst.msk [vmem:[#allocation0] sm:$0x1] %vm46_vm8, %v45_v19   ;;  %v57_v21 = vpop.permute.xlu1 %56  }
  0x82   :  { %v51_v22 = vpop.permute.xlu0 %50  }
  0x83   :  { %53 = vst.msk [vmem:[#allocation0] sm:$0x1] %vm52_vm9, %v51_v22  }
  0x84   :  { %59 = vst.msk [vmem:[#allocation0] sm:$0x1] %vm58_vm10, %v57_v21   ;;  %v69_v23 = vpop.permute.xlu1 %68  }
  0x85   :  { %72 = vst.msk [vmem:[#allocation0 + $0x8] sm:$0x1] %vm70_vm11, %v69_v23  }
  0x86   :  { %v63_v24 = vpop.permute.xlu0 %62  }
  0x87   :  { %65 = vst.msk [vmem:[#allocation0] sm:$0x1] %vm64_vm12, %v63_v24  }
  0x88   :  { %v82_v25 = vpop.permute.xlu1 %81  }
  0x89   :  { %85 = vst.msk [vmem:[#allocation0 + $0x8] sm:$0x1] %vm83_vm13, %v82_v25  }
  0x8a   :  { %v76_v26 = vpop.permute.xlu0 %75  }
  0x8b   :  { %78 = vst.msk [vmem:[#allocation0] sm:$0x1] %vm77_vm14, %v76_v26  }
  0x90   :  { %v95_v27 = vld [vmem:[#allocation0 + $0x8] sm:$0x1] }
  0x91   :  { %113 = vst [vmem:[%s197_s1 + $0x1] sm:$0x1] %v95_v27 }
  0x92   :  { %v90_v28 = vld [vmem:[#allocation0] sm:$0x1] }
  0x93   :  { %93 = vst [vmem:[%s197_s1] sm:$0x1] %v90_v28 }

// kernel: patch_cnn_forward.1
= control target key start
LH: loop header
LB: loop body
LE: loop exit
PB: predicated region body
PF: predicated region fallthrough
CT: control target
= control target key end

     0   :  { %v609_v3 = vmov 0.0   ;;  %vm42_vm0 = vcmask 392192   ;;  %v16_v58 = vlaneseq  ;;  %vm544_vm4 = vcmask 228352   ;;  %s945_s1 = inlined_call_operand.vmem [shape: f32[4,48,156], index: 1, kind: input, shape index: {}]   ;;  %s946_s0 = inlined_call_operand.vmem [shape: f32[32,48], index: 0, kind: input, shape index: {}]   ;;  %s947_s2 = inlined_call_operand.vmem [shape: f32[1,156], index: 2, kind: input, shape index: {}]   ;;  %s948_s3 = inlined_call_operand.vmem [shape: f32[32,156], index: 3, kind: output, shape index: {}]  }
   0x1   :  { %v41_v0 = vld [vmem:[%s945_s1 + $0x58] sm:$0xff]  ;;  %v40_v2 = vld [vmem:[%s945_s1 + $0x50] sm:$0xff]  ;;  %119 = vmatprep.mubr.f32.mxu0 %v609_v3  ;;  %229 = vmatprep.mubr.f32.mxu1 %v609_v3  ;;  %v39_v5 = vld [vmem:[%s945_s1 + $0x48] sm:$0xff] }
   0x2   :  { %v571_v1 = vld [vmem:[%s945_s1 + $0xb8] sm:$0xff]  ;;  %75 = vmatprep.subr.mxu0 %v41_v0  ;;  %v570_v4 = vld [vmem:[%s945_s1 + $0xb0] sm:$0xff]  ;;  %v569_v6 = vld [vmem:[%s945_s1 + $0xa8] sm:$0xff]  ;;  %v832_v62 = vshrl.u32 %v16_v58, 7 }
   0x3   :  { %185 = vmatprep.subr.mxu1 %v571_v1  ;;  %76 = vmatpush1.msra.mxu0 %v40_v2  ;;  %v38_v7 = vld [vmem:[%s945_s1 + $0x40] sm:$0xff]  ;;  %v37_v9 = vld [vmem:[%s945_s1 + $0x38] sm:$0xff]  ;;  %v36_v11 = vld [vmem:[%s945_s1 + $0x30] sm:$0xff] }
   0x4   :  { %186 = vmatpush1.msra.mxu1 %v570_v4  ;;  %v568_v8 = vld [vmem:[%s945_s1 + $0xa0] sm:$0xff]  ;;  %77 = vmatprep.subr.mxu0 %v39_v5  ;;  %v567_v10 = vld [vmem:[%s945_s1 + $0x98] sm:$0xff]  ;;  %v566_v12 = vld [vmem:[%s945_s1 + $0x90] sm:$0xff]  ;;  %v22_v5 = vsub.s32 1, %v832_v62  ;;  %vm264_vm1 = vcmp.lt.s32.totalorder %v832_v62, 7  ;;  %vm391_vm2 = vcmp.lt.s32.totalorder %v832_v62, 6 }
   0x5   :  { %187 = vmatprep.subr.mxu1 %v569_v6  ;;  %78 = vmatpush1.msra.mxu0 %v38_v7  ;;  %v35_v13 = vld [vmem:[%s945_s1 + $0x28] sm:$0xff]  ;;  %v34_v15 = vld [vmem:[%s945_s1 + $0x20] sm:$0xff]  ;;  %v33_v17 = vld [vmem:[%s945_s1 + $0x18] sm:$0xff]  ;;  %vm518_vm3 = vcmp.lt.s32.totalorder %v832_v62, 5 }
   0x6   :  { %188 = vmatpush1.msra.mxu1 %v568_v8  ;;  %v565_v14 = vld [vmem:[%s945_s1 + $0x88] sm:$0xff]  ;;  %79 = vmatprep.subr.mxu0 %v37_v9  ;;  %v564_v16 = vld [vmem:[%s945_s1 + $0x80] sm:$0xff]  ;;  %v563_v18 = vld [vmem:[%s945_s1 + $0x78] sm:$0xff] }
   0x7   :  { %189 = vmatprep.subr.mxu1 %v567_v10  ;;  %80 = vmatpush1.msra.mxu0 %v36_v11  ;;  %v32_v19 = vld [vmem:[%s945_s1 + $0x10] sm:$0xff]  ;;  %v31_v21 = vld [vmem:[%s945_s1 + $0x8] sm:$0xff]  ;;  %v30_v23 = vld [vmem:[%s945_s1] sm:$0xff] }
   0x8   :  { %190 = vmatpush1.msra.mxu1 %v566_v12  ;;  %81 = vmatprep.subr.mxu0 %v35_v13  ;;  %v562_v20 = vld [vmem:[%s945_s1 + $0x70] sm:$0xff]  ;;  %v561_v22 = vld [vmem:[%s945_s1 + $0x68] sm:$0xff]  ;;  %v560_v24 = vld [vmem:[%s945_s1 + $0x60] sm:$0xff] }
   0x9   :  { %191 = vmatprep.subr.mxu1 %v565_v14  ;;  %82 = vmatpush1.msra.mxu0 %v34_v15  ;;  %v707_v25 = vld [vmem:[%s946_s0] sm:$0xff]  ;;  %v587_v26 = vld [vmem:[%s945_s1 + $0x118] sm:$0xff]  ;;  %v586_v28 = vld [vmem:[%s945_s1 + $0x110] sm:$0xff] }
   0xa   :  { %192 = vmatpush1.msra.mxu1 %v564_v16  ;;  %83 = vmatprep.subr.mxu0 %v33_v17  ;;  %v603_v27 = vld [vmem:[%s945_s1 + $0x178] sm:$0xff]  ;;  %v585_v29 = vld [vmem:[%s945_s1 + $0x108] sm:$0xff]  ;;  %v602_v30 = vld [vmem:[%s945_s1 + $0x170] sm:$0xff] }
   0xb   :  { %193 = vmatprep.subr.mxu1 %v563_v18  ;;  %84 = vmatpush1.msra.mxu0 %v32_v19  ;;  %v731_v31 = vld [vmem:[%s946_s0 + $0x8] sm:$0xff]  ;;  %v584_v32 = vld [vmem:[%s945_s1 + $0x100] sm:$0xff]  ;;  %v583_v34 = vld [vmem:[%s945_s1 + $0xf8] sm:$0xff] }
   0xc   :  { %194 = vmatpush1.msra.mxu1 %v562_v20  ;;  %85 = vmatprep.subr.mxu0 %v31_v21  ;;  %v601_v33 = vld [vmem:[%s945_s1 + $0x168] sm:$0xff]  ;;  %v600_v35 = vld [vmem:[%s945_s1 + $0x160] sm:$0xff]  ;;  %v582_v36 = vld [vmem:[%s945_s1 + $0xf0] sm:$0xff] }
   0xd   :  { %195 = vmatprep.subr.mxu1 %v561_v22  ;;  %86 = vmatpush1.msra.mxu0 %v30_v23  ;;  %v28_v37 = vld [vmem:[%s946_s0 + $0x10] sm:$0xff]  ;;  %v581_v38 = vld [vmem:[%s945_s1 + $0xe8] sm:$0xff]  ;;  %v599_v39 = vld [vmem:[%s945_s1 + $0x158] sm:$0xff] }
   0xe   :  { %196 = vmatpush1.msra.mxu1 %v560_v24  ;;  %556 = vmatmul.mubr.msk.f32.vlgmr.msra.gmra.mxu0 %vm42_vm0, %v707_v25  ;;  %v580_v40 = vld [vmem:[%s945_s1 + $0xe0] sm:$0xff]  ;;  %v598_v41 = vld [vmem:[%s945_s1 + $0x150] sm:$0xff]  ;;  %v597_v42 = vld [vmem:[%s945_s1 + $0x148] sm:$0xff] }
   0xf   :  { %572 = vmatmul.mubr.msk.f32.vlgmr.msra.gmra.mxu1 %vm42_vm0, %v707_v25  ;;  %314 = vmatprep.subr.mxu0 %v587_v26  ;;  %v579_v43 = vld [vmem:[%s945_s1 + $0xd8] sm:$0xff]  ;;  %v596_v44 = vld [vmem:[%s945_s1 + $0x140] sm:$0xff]  ;;  %v578_v46 = vld [vmem:[%s945_s1 + $0xd0] sm:$0xff] }
  0x10   :  { %441 = vmatprep.subr.mxu1 %v603_v27  ;;  %315 = vmatpush1.msra.mxu0 %v586_v28  ;;  %v29_v45 = vld [vmem:[%s946_s0 + $0x18] sm:$0xff]  ;;  %v577_v48 = vld [vmem:[%s945_s1 + $0xc8] sm:$0xff]  ;;  %v594_v49 = vld [vmem:[%s945_s1 + $0x130] sm:$0xff] }
  0x11   :  { %125 = vmatprep.mubr.f32.mxu0 %v609_v3  ;;  %235 = vmatprep.mubr.f32.mxu1 %v609_v3  ;;  %v595_v47 = vld [vmem:[%s945_s1 + $0x138] sm:$0xff]  ;;  %v576_v50 = vld [vmem:[%s945_s1 + $0xc0] sm:$0xff]  ;;  %v593_v51 = vld [vmem:[%s945_s1 + $0x128] sm:$0xff] }
  0x12   :  { %316 = vmatprep.subr.mxu0 %v585_v29  ;;  %442 = vmatpush1.msra.mxu1 %v602_v30  ;;  %v592_v52 = vld [vmem:[%s945_s1 + $0x120] sm:$0xff] }
  0x13   :  { %557 = vmatmul.mubr.msk.f32.gmra.mxu0 %vm42_vm0, %v731_v31  ;;  %573 = vmatmul.mubr.msk.f32.gmra.mxu1 %vm42_vm0, %v731_v31  ;;  %v14_v4 = vld [vmem:[%s947_s2] sm:$0x3] }
  0x14   :  { %317 = vmatpush1.msra.mxu0 %v584_v32  ;;  %443 = vmatprep.subr.mxu1 %v601_v33  ;;  %v23_v15 = vrot.slane %v14_v4, %v22_v5 }
  0x15   :  { %318 = vmatprep.subr.mxu0 %v583_v34  ;;  %444 = vmatpush1.msra.mxu1 %v600_v35 }
  0x16   :  { %131 = vmatprep.mubr.f32.mxu0 %v609_v3  ;;  %241 = vmatprep.mubr.f32.mxu1 %v609_v3 }
  0x17   :  { %319 = vmatpush1.msra.mxu0 %v582_v36  ;;  %574 = vmatmul.mubr.msk.f32.gmra.mxu1 %vm42_vm0, %v28_v37 }
  0x18   :  { %558 = vmatmul.mubr.msk.f32.gmra.mxu0 %vm42_vm0, %v28_v37  ;;  %320 = vmatprep.subr.mxu0 %v581_v38 }
  0x19   :  { %445 = vmatprep.subr.mxu1 %v599_v39  ;;  %321 = vmatpush1.msra.mxu0 %v580_v40 }
  0x1a   :  { %446 = vmatpush1.msra.mxu1 %v598_v41  ;;  %137 = vmatprep.mubr.f32.mxu0 %v609_v3 }
  0x1b   :  { %447 = vmatprep.subr.mxu1 %v597_v42  ;;  %247 = vmatprep.mubr.f32.mxu1 %v609_v3 }
  0x1c   :  { %322 = vmatprep.subr.mxu0 %v579_v43  ;;  %448 = vmatpush1.msra.mxu1 %v596_v44 }
  0x1d   :  { %559 = vmatmul.mubr.msk.f32.gmra.mxu0 %vm42_vm0, %v29_v45  ;;  %575 = vmatmul.mubr.msk.f32.gmra.mxu1 %vm42_vm0, %v29_v45 }
  0x1e   :  { %323 = vmatpush1.msra.mxu0 %v578_v46  ;;  %449 = vmatprep.subr.mxu1 %v595_v47 }
  0x1f   :  { %324 = vmatprep.subr.mxu0 %v577_v48  ;;  %450 = vmatpush1.msra.mxu1 %v594_v49 }
  0x20   :  { %325 = vmatpush1.msra.mxu0 %v576_v50  ;;  %451 = vmatprep.subr.mxu1 %v593_v51 }
  0x21   :  { %358 = vmatprep.mubr.f32.mxu0 %v609_v3  ;;  %452 = vmatpush1.msra.mxu1 %v592_v52 }
  0x22   :  { %485 = vmatprep.mubr.f32.mxu1 %v609_v3  ;;  %588 = vmatmul.mubr.msk.f32.vlgmr.msra.gmra.mxu0 %vm42_vm0, %v707_v25 }
  0x23   :  { %604 = vmatmul.mubr.msk.f32.vlgmr.msra.gmra.mxu1 %vm42_vm0, %v707_v25  ;;  %364 = vmatprep.mubr.f32.mxu0 %v609_v3 }
  0x24   :  { %491 = vmatprep.mubr.f32.mxu1 %v609_v3 }
  0x26   :  { %589 = vmatmul.mubr.msk.f32.gmra.mxu0 %vm42_vm0, %v731_v31 }
  0x27   :  { %605 = vmatmul.mubr.msk.f32.gmra.mxu1 %vm42_vm0, %v731_v31  ;;  %370 = vmatprep.mubr.f32.mxu0 %v609_v3 }
  0x28   :  { %497 = vmatprep.mubr.f32.mxu1 %v609_v3 }
  0x2a   :  { %590 = vmatmul.mubr.msk.f32.gmra.mxu0 %vm42_vm0, %v28_v37 }
  0x2b   :  { %606 = vmatmul.mubr.msk.f32.gmra.mxu1 %vm42_vm0, %v28_v37  ;;  %376 = vmatprep.mubr.f32.mxu0 %v609_v3 }
  0x2c   :  { %503 = vmatprep.mubr.f32.mxu1 %v609_v3  ;;  %v18_v3 = vsub.s32 0, %v832_v62 }
  0x2e   :  { %591 = vmatmul.mubr.msk.f32.gmra.mxu0 %vm42_vm0, %v29_v45  ;;  %v19_v10 = vrot.slane %v14_v4, %v18_v3 }
  0x2f   :  { %607 = vmatmul.mubr.msk.f32.gmra.mxu1 %vm42_vm0, %v29_v45 }
  0xce   :  { %v121_v53 = vpop.f32.mrf.mxu0 }
  0xcf   :  { %v231_v54 = vpop.f32.mrf.mxu1  ;;  %v144_v21 = vadd.f32 %v121_v53, %v19_v10 }
  0xd0   :  { %v123_v55 = vpop.f32.mrf.mxu0  ;;  %v254_v14 = vrot.slane %v231_v54, 1 }
  0xd1   :  { %v830_v56 = vpop.f32.mrf.mxu1  ;;  %v145_v24 = vadd.f32 %v123_v55, %v23_v15 }
  0xd2   :  { %v255_v17 = vrot.slane %v830_v56, 1 }
  0xd3   :  { %v127_v57 = vpop.f32.mrf.mxu0  ;;  %v237_v59 = vpop.f32.mrf.mxu1 }
  0xd4   :  { %v256_v8 = vrot.slane %v237_v59, 1  ;;  %v146_v25 = vadd.f32 %v127_v57, %v19_v10 }
  0xd5   :  { %v129_v60 = vpop.f32.mrf.mxu0  ;;  %v239_v61 = vpop.f32.mrf.mxu1 }
  0xd6   :  { %v257_v11 = vrot.slane %v239_v61, 1  ;;  %v269_v18 = vsel %vm264_vm1, %v254_v14, %v256_v8  ;;  %v147_v31 = vadd.f32 %v129_v60, %v23_v15 }
  0xd7   :  { %v243_v0 = vpop.f32.mrf.mxu1  ;;  %v273_v30 = vadd.f32 %v269_v18, %v144_v21 }
  0xd8   :  { %v133_v63 = vpop.f32.mrf.mxu0  ;;  %v258_v12 = vrot.slane %v243_v0, 1  ;;  %v270_v22 = vsel %vm264_vm1, %v255_v17, %v257_v11 }
  0xd9   :  { %v834_v2 = vpop.f32.mrf.mxu1  ;;  %v274_v32 = vadd.f32 %v270_v22, %v145_v24  ;;  %v148_v33 = vadd.f32 %v133_v63, %v19_v10 }
  0xda   :  { %v135_v1 = vpop.f32.mrf.mxu0  ;;  %v259_v16 = vrot.slane %v834_v2, 1  ;;  %v267_v23 = vsel %vm264_vm1, %v256_v8, %v258_v12 }
  0xdb   :  { %v275_v34 = vadd.f32 %v267_v23, %v146_v25  ;;  %v149_v35 = vadd.f32 %v135_v1, %v23_v15 }
  0xdc   :  { %v268_v26 = vsel %vm264_vm1, %v257_v11, %v259_v16 }
  0xdd   :  { %v139_v6 = vpop.f32.mrf.mxu0  ;;  %v249_v7 = vpop.f32.mrf.mxu1  ;;  %v276_v38 = vadd.f32 %v268_v26, %v147_v31 }
  0xde   :  { %v260_v27 = vrot.slane %v249_v7, 1  ;;  %v150_v42 = vadd.f32 %v139_v6, %v19_v10 }
  0xdf   :  { %v141_v9 = vpop.f32.mrf.mxu0  ;;  %v842_v13 = vpop.f32.mrf.mxu1 }
  0xe0   :  { %v265_v43 = vsel %vm264_vm1, %v258_v12, %v260_v27  ;;  %v271_v44 = vsel %vm264_vm1, %v260_v27, %v254_v14  ;;  %v151_v52 = vadd.f32 %v141_v9, %v23_v15  ;;  %v261_v53 = vrot.slane %v842_v13, 1 }
  0xe1   :  { %v277_v0 = vadd.f32 %v265_v43, %v148_v33  ;;  %v279_v1 = vadd.f32 %v271_v44, %v150_v42 }
  0xe2   :  { %v848_v19 = vpop.f32.mrf.mxu0  ;;  %v266_v10 = vsel %vm264_vm1, %v259_v16, %v261_v53  ;;  %v272_v22 = vsel %vm264_vm1, %v261_v53, %v255_v17 }
  0xe3   :  { %v850_v20 = vpop.f32.mrf.mxu1  ;;  %v383_v39 = vrot.slane %v848_v19, 2  ;;  %v278_v27 = vadd.f32 %v266_v10, %v149_v35 }
  0xe4   :  { %v860_v28 = vpop.f32.mrf.mxu0  ;;  %v510_v45 = vrot.slane %v850_v20, 3 }
  0xe5   :  { %v862_v29 = vpop.f32.mrf.mxu1  ;;  %v384_v48 = vrot.slane %v860_v28, 2 }
  0xe6   :  { %v366_v36 = vpop.f32.mrf.mxu0  ;;  %v511_v54 = vrot.slane %v862_v29, 3 }
  0xe7   :  { %v493_v37 = vpop.f32.mrf.mxu1  ;;  %v385_v40 = vrot.slane %v366_v36, 2 }
  0xe8   :  { %v512_v41 = vrot.slane %v493_v37, 3  ;;  %v368_v46 = vpop.f32.mrf.mxu0 }
  0xe9   :  { %v495_v47 = vpop.f32.mrf.mxu1  ;;  %v396_v49 = vsel %vm391_vm2, %v383_v39, %v385_v40  ;;  %v386_v50 = vrot.slane %v368_v46, 2 }
  0xea   :  { %v513_v51 = vrot.slane %v495_v47, 3  ;;  %v400_v55 = vadd.f32 %v396_v49, %v273_v30  ;;  %v372_v57 = vpop.f32.mrf.mxu0  ;;  %v523_v59 = vsel %vm518_vm3, %v510_v45, %v512_v41 }
  0xeb   :  { %v499_v58 = vpop.f32.mrf.mxu1  ;;  %v397_v60 = vsel %vm391_vm2, %v384_v48, %v386_v50  ;;  %v387_v61 = vrot.slane %v372_v57, 2 }
  0xec   :  { %v514_v63 = vrot.slane %v499_v58, 3  ;;  %v527_v2 = vadd.f32 %v523_v59, %v400_v55  ;;  %v401_v3 = vadd.f32 %v397_v60, %v274_v32  ;;  %v374_v4 = vpop.f32.mrf.mxu0  ;;  %v524_v6 = vsel %vm518_vm3, %v511_v54, %v513_v51 }
  0xed   :  { %v501_v5 = vpop.f32.mrf.mxu1  ;;  %v394_v7 = vsel %vm391_vm2, %v385_v40, %v387_v61  ;;  %v388_v8 = vrot.slane %v374_v4, 2 }
  0xee   :  { %v515_v9 = vrot.slane %v501_v5, 3  ;;  %v535_v11 = vmax.f32 %v527_v2, 0.0  ;;  %v528_v12 = vadd.f32 %v524_v6, %v401_v3  ;;  %v402_v13 = vadd.f32 %v394_v7, %v275_v34  ;;  %v378_v14 = vpop.f32.mrf.mxu0 }
  0xef   :  { %v505_v15 = vpop.f32.mrf.mxu1  ;;  %v521_v18 = vsel %vm518_vm3, %v512_v41, %v514_v63  ;;  %v395_v19 = vsel %vm391_vm2, %v386_v50, %v388_v8  ;;  %v389_v20 = vrot.slane %v378_v14, 2 }
  0xf0   :  { %v516_v21 = vrot.slane %v505_v15, 3  ;;  %543 = vst [vmem:[%s948_s3] sm:$0xff] %v535_v11  ;;  %v536_v16 = vmax.f32 %v528_v12, 0.0  ;;  %v529_v23 = vadd.f32 %v521_v18, %v402_v13  ;;  %v403_v24 = vadd.f32 %v395_v19, %v276_v38  ;;  %v380_v25 = vpop.f32.mrf.mxu0 }
  0xf1   :  { %v507_v26 = vpop.f32.mrf.mxu1  ;;  %v522_v28 = vsel %vm518_vm3, %v513_v51, %v515_v9  ;;  %v392_v30 = vsel %vm391_vm2, %v387_v61, %v389_v20  ;;  %v398_v56 = vsel %vm391_vm2, %v389_v20, %v383_v39  ;;  %v390_v36 = vrot.slane %v380_v25, 2 }
  0xf2   :  { %545 = vst.msk [vmem:[%s948_s3 + $0x8] sm:$0xff] %vm544_vm4, %v536_v16  ;;  %v537_v17 = vmax.f32 %v529_v23, 0.0  ;;  %v530_v31 = vadd.f32 %v522_v28, %v403_v24  ;;  %v404_v32 = vadd.f32 %v392_v30, %v277_v0  ;;  %v406_v33 = vadd.f32 %v398_v56, %v279_v1 }
  0xf3   :  { %v519_v34 = vsel %vm518_vm3, %v514_v63, %v516_v21  ;;  %v525_v35 = vsel %vm518_vm3, %v516_v21, %v510_v45  ;;  %v517_v37 = vrot.slane %v507_v26, 3  ;;  %v280_v38 = vadd.f32 %v272_v22, %v151_v52 }
  0xf4   :  { %546 = vst [vmem:[%s948_s3 + $0x10] sm:$0xff] %v537_v17  ;;  %v538_v39 = vmax.f32 %v530_v31, 0.0  ;;  %v531_v40 = vadd.f32 %v519_v34, %v404_v32  ;;  %v533_v41 = vadd.f32 %v525_v35, %v406_v33  ;;  %v393_v42 = vsel %vm391_vm2, %v388_v8, %v390_v36 }
  0xf5   :  { %v399_v43 = vsel %vm391_vm2, %v390_v36, %v384_v48  ;;  %v405_v46 = vadd.f32 %v393_v42, %v278_v27  ;;  %v520_v49 = vsel %vm518_vm3, %v515_v9, %v517_v37  ;;  %v526_v50 = vsel %vm518_vm3, %v517_v37, %v511_v54 }
  0xf6   :  { %547 = vst.msk [vmem:[%s948_s3 + $0x18] sm:$0xff] %vm544_vm4, %v538_v39  ;;  %v539_v44 = vmax.f32 %v531_v40, 0.0  ;;  %v541_v45 = vmax.f32 %v533_v41, 0.0  ;;  %v407_v47 = vadd.f32 %v399_v43, %v280_v38 }
  0xf7   :  { %v532_v48 = vadd.f32 %v520_v49, %v405_v46 }
  0xf8   :  { %548 = vst [vmem:[%s948_s3 + $0x20] sm:$0xff] %v539_v44  ;;  %550 = vst [vmem:[%s948_s3 + $0x30] sm:$0xff] %v541_v45  ;;  %v534_v51 = vadd.f32 %v526_v50, %v407_v47 }
  0xf9   :  { %v540_v52 = vmax.f32 %v532_v48, 0.0 }
  0xfa   :  { %v542_v53 = vmax.f32 %v534_v51, 0.0 }
  0xfb   :  { %549 = vst.msk [vmem:[%s948_s3 + $0x28] sm:$0xff] %vm544_vm4, %v540_v52 }
  0xfc   :  { %551 = vst.msk [vmem:[%s948_s3 + $0x38] sm:$0xff] %vm544_vm4, %v542_v53 }

</bundles_post_ra>
